<compile_context>
chip_gen: v5e
topology: v5e:2x2
jax: 0.10.0
libtpu: 0.0.40
codegen_flags: <defaults>
</compile_context>

<pallas_src>
import functools
import math

import jax
import jax.numpy as jnp
from jax import lax
from jax.experimental import pallas as pl
from jax.experimental.pallas import tpu as pltpu

NEG_INF = float(jnp.finfo(jnp.float32).min)  # matches torch.finfo(float32).min


# ---------------------------------------------------------------------------
# Small helpers
# ---------------------------------------------------------------------------
def _round_up(x: int, m: int) -> int:
    return (x + m - 1) // m * m


def _pick_tile(dim: int, preferred: int, multiple: int) -> int:
    """Largest tile <= preferred that divides `dim` and is a multiple of `multiple`.
    Falls back to the full dim (always a legal full-extent block)."""
    if dim <= preferred:
        return dim
    start = preferred - (preferred % multiple)
    for t in range(start, multiple - 1, -multiple):
        if dim % t == 0:
            return t
    return dim


@functools.lru_cache(maxsize=None)
def _vmem_limit_bytes() -> int:
    """Generation-aware scoped-VMEM budget.
    v5e/v6e (128 MiB physical) -> 96 MiB; v7x (64 MiB physical) -> 48 MiB."""
    cap = 128 * 1024 * 1024
    try:
        cap = int(getattr(pltpu.get_tpu_info(), "vmem_capacity_bytes", cap))
    except Exception:
        pass
    return max(32 * 1024 * 1024, min(cap - 16 * 1024 * 1024, 96 * 1024 * 1024))


def _sublane(dtype) -> int:
    # bf16 packs (16, 128) per vreg; f32 packs (8, 128).
    return 16 if jnp.dtype(dtype).itemsize == 2 else 8


# ---------------------------------------------------------------------------
# Linear kernels:  y = x @ W + b   (W stored as (Din, Dout), b as (1, Dout))
# ---------------------------------------------------------------------------
def _linear_resident_kernel(x_ref, w_ref, b_ref, o_ref):
    # W fully resident in VMEM: no reduction axis, no accumulator revisits.
    o_ref[...] = (jnp.dot(x_ref[...], w_ref[...],
                          preferred_element_type=jnp.float32)
                  + b_ref[...]).astype(o_ref.dtype)


def _linear_tiled_kernel(x_ref, w_ref, b_ref, o_ref, acc_ref):
    k = pl.program_id(2)

    @pl.when(k == 0)
    def _():
        acc_ref[...] = jnp.zeros_like(acc_ref)

    acc_ref[...] += jnp.dot(x_ref[...], w_ref[...],
                            preferred_element_type=jnp.float32)

    @pl.when(k == pl.num_programs(2) - 1)
    def _():
        o_ref[...] = (acc_ref[...] + b_ref[...]).astype(o_ref.dtype)


def pallas_linear(x, w, b, *, tm=512, tn=512, tk=1024):
    # x: (M, Din), w: (Din, Dout), b: (1, Dout)
    M, Din = x.shape
    Dout = w.shape[1]
    itemsize = jnp.dtype(x.dtype).itemsize
    sub = _sublane(x.dtype)
    limit = _vmem_limit_bytes()

    # Pad M so the row tile always divides it (no giant full-dim fallback block).
    TM = min(tm, _round_up(M, sub))
    Mp = _round_up(M, TM)
    xp = x if Mp == M else jnp.pad(x, ((0, Mp - M), (0, 0)))

    w_bytes = Din * Dout * itemsize
    resident_bytes = w_bytes + 2 * TM * (Din + Dout) * itemsize   # W + dbl-buffered x/out
    resident_ok = resident_bytes <= limit // 3

    if resident_ok:
        out = pl.pallas_call(
            _linear_resident_kernel,
            out_shape=jax.ShapeDtypeStruct((Mp, Dout), x.dtype),
            grid_spec=pltpu.PrefetchScalarGridSpec(
                num_scalar_prefetch=0,
                grid=(Mp // TM,),
                in_specs=[
                    pl.BlockSpec((TM, Din), lambda i: (i, 0)),
                    pl.BlockSpec((Din, Dout), lambda i: (0, 0)),   # resident weight
                    pl.BlockSpec((1, Dout), lambda i: (0, 0)),
                ],
                out_specs=pl.BlockSpec((TM, Dout), lambda i: (i, 0)),
            ),
            compiler_params=pltpu.CompilerParams(
                dimension_semantics=("parallel",),
                vmem_limit_bytes=limit,
            ),
        )(xp, w, b)
    else:
        TN = _pick_tile(Dout, tn, multiple=128)
        TK = _pick_tile(Din, tk, multiple=128)
        out = pl.pallas_call(
            _linear_tiled_kernel,
            out_shape=jax.ShapeDtypeStruct((Mp, Dout), x.dtype),
            grid_spec=pltpu.PrefetchScalarGridSpec(
                num_scalar_prefetch=0,
                grid=(Mp // TM, Dout // TN, Din // TK),
                in_specs=[
                    pl.BlockSpec((TM, TK), lambda i, j, k: (i, k)),
                    pl.BlockSpec((TK, TN), lambda i, j, k: (k, j)),
                    pl.BlockSpec((1, TN), lambda i, j, k: (0, j)),
                ],
                out_specs=pl.BlockSpec((TM, TN), lambda i, j, k: (i, j)),
                scratch_shapes=[pltpu.VMEM((TM, TN), jnp.float32)],
            ),
            compiler_params=pltpu.CompilerParams(
                dimension_semantics=("parallel", "parallel", "arbitrary"),
                vmem_limit_bytes=limit,
            ),
        )(xp, w, b)

    return out[:M] if Mp != M else out


# ---------------------------------------------------------------------------
# Flash-style attention core with fused output projection.
#   grid = (B, Lq/TQ, Lk/TKV), KV axis last ("arbitrary").
#   q_ref   : (1, TQ, D)    decoder queries (scale folded into W_Q)
#   kv_ref  : (1, TKV, 2D)  [K | V] fused projection tile
#   bias_ref: (1, 1, TKV)   additive key-padding bias (0 or NEG_INF), f32
#   wo_ref  : (D, D), bo_ref: (1, D)   output projection (resident)
#   o_ref   : (1, TQ, D)
#   scratch : per-head m/l (H, TQ, 1), acc (H, TQ, d_h), out slab (TQ, D)
# ---------------------------------------------------------------------------
def _attn_kernel(q_ref, kv_ref, bias_ref, wo_ref, bo_ref, o_ref,
                 m_sc, l_sc, acc_sc, out_sc, *, n_head, d_h, has_bias):
    kv_step = pl.program_id(2)

    @pl.when(kv_step == 0)
    def _():
        m_sc[...] = jnp.full_like(m_sc, -jnp.inf)
        l_sc[...] = jnp.zeros_like(l_sc)
        acc_sc[...] = jnp.zeros_like(acc_sc)

    q = q_ref[0]            # (TQ, D)
    kv = kv_ref[0]          # (TKV, 2D)
    d_model = n_head * d_h
    tq = q.shape[0]
    tkv = kv.shape[0]

    if has_bias:
        # Hoist the (1, TKV) -> (TQ, TKV) broadcast out of the head loop
        # (JAX does not CSE broadcast_in_dim).
        bias = jnp.broadcast_to(bias_ref[0], (tq, tkv)).astype(jnp.float32)

    for h in range(n_head):                               # static unroll
        lo = h * d_h
        qh = q[:, lo:lo + d_h]                            # (TQ, d_h)
        kh = kv[:, lo:lo + d_h]                           # (TKV, d_h)  K half
        vh = kv[:, d_model + lo:d_model + lo + d_h]       # (TKV, d_h)  V half

        # scores = qh @ kh^T without materializing the transpose (f32 accum).
        s = lax.dot_general(qh, kh, (((1,), (1,)), ((), ())),
                            preferred_element_type=jnp.float32)   # (TQ, TKV)
        if has_bias:
            s = s + bias

        # Online softmax update (per-head running max / sum / accumulator).
        m_prev = m_sc[h]                                   # (TQ, 1)
        m_new = jnp.maximum(m_prev, jnp.max(s, axis=-1, keepdims=True))
        alpha = jnp.exp(m_prev - m_new)
        p = jnp.exp(s - m_new)
        l_sc[h] = alpha * l_sc[h] + jnp.sum(p, axis=-1, keepdims=True)
        acc_sc[h] = alpha * acc_sc[h] + lax.dot_general(
            p.astype(vh.dtype), vh, (((1,), (0,)), ((), ())),
            preferred_element_type=jnp.float32)            # (TQ, d_h)
        m_sc[h] = m_new

    @pl.when(kv_step == pl.num_programs(2) - 1)
    def _():
        # Per-head normalize straight into a (TQ, D) VMEM slab (no concat, no
        # register spill), then the fused output projection + single store.
        for h in range(n_head):
            lo = h * d_h
            out_sc[:, lo:lo + d_h] = acc_sc[h] * pl.reciprocal(l_sc[h])  # exact
        proj = jnp.dot(out_sc[...].astype(wo_ref.dtype), wo_ref[...],
                       preferred_element_type=jnp.float32) + bo_ref[...]
        o_ref[0] = proj.astype(o_ref.dtype)


def pallas_mha_core(q, kv, bias, wo, bo, n_head, *, has_bias, tq=256, tkv=512):
    # q: (B, Lq, D), kv: (B, Lk, 2D), bias: (B, 1, Lk) f32, wo: (D, D), bo: (1, D)
    B, Lq, D = q.shape
    Lk = kv.shape[1]
    d_h = D // n_head
    sub = _sublane(q.dtype)
    limit = _vmem_limit_bytes()

    # Pad Lq so the q tile always divides (padded rows are sliced off below).
    TQ = min(tq, _round_up(Lq, sub))
    Lqp = _round_up(Lq, TQ)
    if Lqp != Lq:
        q = jnp.pad(q, ((0, 0), (0, Lqp - Lq), (0, 0)))

    # KV tile: multiple of 128 (lane-legal for the bias block) or full Lk.
    TKV = _pick_tile(Lk, tkv, multiple=128)

    kernel = functools.partial(_attn_kernel, n_head=n_head, d_h=d_h,
                               has_bias=has_bias)

    out = pl.pallas_call(
        kernel,
        out_shape=jax.ShapeDtypeStruct((B, Lqp, D), q.dtype),
        grid_spec=pltpu.PrefetchScalarGridSpec(
            num_scalar_prefetch=0,
            grid=(B, Lqp // TQ, Lk // TKV),
            in_specs=[
                pl.BlockSpec((1, TQ, D), lambda b, i, j: (b, i, 0)),
                pl.BlockSpec((1, TKV, 2 * D), lambda b, i, j: (b, j, 0)),
                pl.BlockSpec((1, 1, TKV), lambda b, i, j: (b, 0, j)),
                pl.BlockSpec((D, D), lambda b, i, j: (0, 0)),      # resident W_O
                pl.BlockSpec((1, D), lambda b, i, j: (0, 0)),      # resident b_O
            ],
            out_specs=pl.BlockSpec((1, TQ, D), lambda b, i, j: (b, i, 0)),
            scratch_shapes=[
                pltpu.VMEM((n_head, TQ, 1), jnp.float32),    # running max
                pltpu.VMEM((n_head, TQ, 1), jnp.float32),    # running sum
                pltpu.VMEM((n_head, TQ, d_h), jnp.float32),  # running PV accumulator
                pltpu.VMEM((TQ, D), jnp.float32),            # pre-projection slab
            ],
        ),
        compiler_params=pltpu.CompilerParams(
            dimension_semantics=("parallel", "parallel", "arbitrary"),
            vmem_limit_bytes=limit,
        ),
    )(q, kv, bias, wo, bo)

    return out[:, :Lq] if Lqp != Lq else out


# ---------------------------------------------------------------------------
# Parameter init (deterministic, mimics nn.Linear uniform(-1/sqrt(fan_in), ...))
# ---------------------------------------------------------------------------
def _init_linear(key, fan_in, fan_out):
    kw, kb = jax.random.split(key)
    bound = 1.0 / math.sqrt(fan_in)
    w = jax.random.uniform(kw, (fan_in, fan_out), jnp.float32, -bound, bound)
    b = jax.random.uniform(kb, (1, fan_out), jnp.float32, -bound, bound)
    return w, b


class MultiHeadCrossAttentionPallas:
    """Cross-attention: Q from decoder states, K/V from encoder states.
    Matches MultiHeadCrossAttention forward semantics in eval mode."""

    def __init__(self, d_model, n_head, key, compute_dtype=jnp.float32):
        assert d_model % n_head == 0
        self.d_model = d_model
        self.n_head = n_head
        self.d_h = d_model // n_head
        # Use jnp.bfloat16 on v6e/v7x for full MXU rate (accumulation stays f32
        # via preferred_element_type; softmax math is f32 inside the kernel).
        # Demo keeps f32 for tight verification.
        self.compute_dtype = compute_dtype

        kq, kk, kv, ko = jax.random.split(key, 4)
        self.wq, self.bq = _init_linear(kq, d_model, d_model)
        self.wk, self.bk = _init_linear(kk, d_model, d_model)
        self.wv, self.bv = _init_linear(kv, d_model, d_model)
        self.wo, self.bo = _init_linear(ko, d_model, d_model)

        # Fold 1/sqrt(d_h) into W_Q / b_Q once (zero per-forward cost; removes a
        # (TQ, D) VPU multiply per attention grid step).  Raw weights are kept
        # for the pure-JAX reference.
        scale = 1.0 / math.sqrt(self.d_h)
        self.wq_s = self.wq * scale
        self.bq_s = self.bq * scale

        # Fused K/V projection weights (numerically identical to separate K/V).
        self.wkv = jnp.concatenate([self.wk, self.wv], axis=1)   # (D, 2D)
        self.bkv = jnp.concatenate([self.bk, self.bv], axis=1)   # (1, 2D)

    def __call__(self, q_input, kv_input, key_padding_mask=None):
        B, Lq, D = q_input.shape
        _, Lk, _ = kv_input.shape
        cd = self.compute_dtype

        xq = q_input.reshape(B * Lq, D).astype(cd)
        xkv = kv_input.reshape(B * Lk, D).astype(cd)

        # Projections (Pallas matmul kernels); K and V fused -> kv_input read
        # from HBM once, 2D-wide lane-dense output.  Q projection carries the
        # folded 1/sqrt(d_h) scale.
        q = pallas_linear(xq, self.wq_s.astype(cd),
                          self.bq_s.astype(cd)).reshape(B, Lq, D)
        kvp = pallas_linear(xkv, self.wkv.astype(cd),
                            self.bkv.astype(cd)).reshape(B, Lk, 2 * D)

        # Additive key-padding bias (0 / NEG_INF), precomputed once in the wrapper.
        has_bias = key_padding_mask is not None
        if has_bias:
            bias = jnp.where(
                key_padding_mask.astype(jnp.bool_).reshape(B, 1, Lk),
                NEG_INF, 0.0).astype(jnp.float32)
        else:
            bias = jnp.zeros((B, 1, Lk), jnp.float32)   # tiny; add skipped in-kernel

        # Flash-style attention with the output projection fused in the epilogue.
        out = pallas_mha_core(q, kvp, bias, self.wo.astype(cd),
                              self.bo.astype(cd), self.n_head, has_bias=has_bias)
        return out   # (B, Lq, D); dropout is identity (eval mode)


# ---------------------------------------------------------------------------
# Pure-JAX reference for verification
# ---------------------------------------------------------------------------
def reference_forward(mod, q_input, kv_input, key_padding_mask):
    B, Lq, D = q_input.shape
    _, Lk, _ = kv_input.shape
    H, dh = mod.n_head, mod.d_h
    q = q_input.reshape(B * Lq, D) @ mod.wq + mod.bq
    k = kv_input.reshape(B * Lk, D) @ mod.wk + mod.bk
    v = kv_input.reshape(B * Lk, D) @ mod.wv + mod.bv
    qh = q.reshape(B, Lq, H, dh).transpose(0, 2, 1, 3)
    kh = k.reshape(B, Lk, H, dh).transpose(0, 2, 1, 3)
    vh = v.reshape(B, Lk, H, dh).transpose(0, 2, 1, 3)
    sim = jnp.einsum("bhqd,bhkd->bhqk", qh, kh) / math.sqrt(dh)
    if key_padding_mask is not None:
        m = key_padding_mask[:, None, None, :]
        sim = jnp.where(m, NEG_INF, sim)
    attn = jax.nn.softmax(sim, axis=-1)
    out = jnp.einsum("bhqk,bhkd->bhqd", attn, vh)
    out = out.transpose(0, 2, 1, 3).reshape(B, Lq, D)
    return (out.reshape(B * Lq, D) @ mod.wo + mod.bo).reshape(B, Lq, D)


if __name__ == "__main__":
    d_model, n_head = 32, 4
    B, Lq, Lk = 2, 8, 16

    root = jax.random.PRNGKey(0)
    k_params, k_q, k_kv = jax.random.split(root, 3)

    module = MultiHeadCrossAttentionPallas(d_model, n_head, k_params)

    q_input = jax.random.normal(k_q, (B, Lq, d_model), jnp.float32)
    kv_input = jax.random.normal(k_kv, (B, Lk, d_model), jnp.float32)
    # Pad the last 4 key positions of batch element 1 (True = padded)
    key_padding_mask = jnp.zeros((B, Lk), jnp.bool_).at[1, -4:].set(True)

    out = module(q_input, kv_input, key_padding_mask)
    out = jax.block_until_ready(out)
    ref = reference_forward(module, q_input, kv_input, key_padding_mask)
    assert out.shape == (B, Lq, d_model)
    assert jnp.allclose(out, ref, atol=2e-3, rtol=2e-3), "mismatch vs reference"

    # Also exercise the no-mask fast path (bias add statically skipped in-kernel).
    out2 = jax.block_until_ready(module(q_input, kv_input, None))
    ref2 = reference_forward(module, q_input, kv_input, None)
    assert jnp.allclose(out2, ref2, atol=2e-3, rtol=2e-3), "mismatch (no mask)"

    print("KERNEL_OK")
</pallas_src>

<mosaic_0001>
module attributes {stable_mosaic.version = 11 : i64} {
  func.func @_linear_resident_kernel(%arg0: i32, %arg1: memref<16x32xf32, #tpu.memory_space<vmem>>, %arg2: memref<32x32xf32, #tpu.memory_space<vmem>>, %arg3: memref<1x32xf32, #tpu.memory_space<vmem>>, %arg4: memref<16x32xf32, #tpu.memory_space<vmem>>) attributes {dimension_semantics = [#tpu.dimension_semantics<parallel>], iteration_bounds = array<i64: 1>, scalar_prefetch = 0 : i64, scratch_operands = 0 : i64, tpu.core_type = #tpu.core_type<tc>, window_params = [{transform_indices = @transform_0, window_bounds = array<i64: 16, 32>}, {pipeline_mode = #tpu.pipeline_mode<synchronous>, transform_indices = @transform_1, window_bounds = array<i64: 32, 32>}, {pipeline_mode = #tpu.pipeline_mode<synchronous>, transform_indices = @transform_2, window_bounds = array<i64: 1, 32>}, {transform_indices = @transform_3, window_bounds = array<i64: 16, 32>}]} {
    %c0 = arith.constant 0 : index
    %c0_0 = arith.constant 0 : index
    %0 = vector.load %arg1[%c0, %c0_0] : memref<16x32xf32, #tpu.memory_space<vmem>>, vector<16x32xf32>
    %c0_1 = arith.constant 0 : index
    %c0_2 = arith.constant 0 : index
    %1 = vector.load %arg2[%c0_1, %c0_2] : memref<32x32xf32, #tpu.memory_space<vmem>>, vector<32x32xf32>
    %cst = arith.constant dense<0.000000e+00> : vector<16x32xf32>
    %2 = tpu.matmul %0, %1, %cst {dimension_numbers = #tpu.dot_dimension_numbers<[1], [0], [0], [1], [0, 0, 1, 1], [], []>} : vector<16x32xf32>, vector<32x32xf32>, vector<16x32xf32> -> vector<16x32xf32>
    %c0_3 = arith.constant 0 : index
    %c0_4 = arith.constant 0 : index
    %3 = vector.load %arg3[%c0_3, %c0_4] : memref<1x32xf32, #tpu.memory_space<vmem>>, vector<1x32xf32>
    %4 = vector.broadcast %3 : vector<1x32xf32> to vector<16x32xf32>
    %5 = arith.addf %2, %4 : vector<16x32xf32>
    %c0_5 = arith.constant 0 : index
    %c0_6 = arith.constant 0 : index
    %6 = vector.load %arg4[%c0_5, %c0_6] : memref<16x32xf32, #tpu.memory_space<vmem>>, vector<16x32xf32>
    tpu.vector_store %arg4[%c0_5, %c0_6], %5 {strides = array<i32>} : memref<16x32xf32, #tpu.memory_space<vmem>>, vector<16x32xf32>,
    return
  }
  func.func @transform_0(%arg0: i32) -> (i32, i32) {
    %c0_i32 = arith.constant 0 : i32
    %c0_i32_0 = arith.constant 0 : i32
    return %arg0, %c0_i32 : i32, i32
  }
  func.func @transform_1(%arg0: i32) -> (i32, i32) {
    %c0_i32 = arith.constant 0 : i32
    %c0_i32_0 = arith.constant 0 : i32
    %c0_i32_1 = arith.constant 0 : i32
    return %c0_i32, %c0_i32_0 : i32, i32
  }
  func.func @transform_2(%arg0: i32) -> (i32, i32) {
    %c0_i32 = arith.constant 0 : i32
    %c0_i32_0 = arith.constant 0 : i32
    %c0_i32_1 = arith.constant 0 : i32
    return %c0_i32, %c0_i32_0 : i32, i32
  }
  func.func @transform_3(%arg0: i32) -> (i32, i32) {
    %c0_i32 = arith.constant 0 : i32
    %c0_i32_0 = arith.constant 0 : i32
    return %arg0, %c0_i32 : i32, i32
  }
}

</mosaic_0001>

<bundles_post_ra>
// kernel: tpu_custom_call.1
= control target key start
LH: loop header
LB: loop body
LE: loop exit
PB: predicated region body
PF: predicated region fallthrough
CT: control target
= control target key end

     0   :  { %8 = vsyncpa [#allocation3], 0  ;;  %s249_s0 = inlined_call_operand.hbm [shape: f32[16,32], index: 0, kind: input, shape index: {}]   ;;  %s250_s1 = inlined_call_operand.hbm [shape: f32[32,32], index: 1, kind: input, shape index: {}]   ;;  %s251_s2 = inlined_call_operand.vmem [shape: f32[1,32], index: 2, kind: input, shape index: {}]   ;;  %s252_s3 = inlined_call_operand.hbm [shape: f32[16,32], index: 3, kind: output, shape index: {}]  }
   0x1   :  { %9 = vsyncpa [#allocation6], 0 }
   0x2   :  { %10 = vsyncpa [#allocation4], 0  ;;  %s15_s14 = sshll.u32 %s249_s0, 4  ;;  %s199_s15 = smov [#allocation2]   ;;  %s16_s14 = int_to_ptr.hbm [resolvable:$true] %s15_s14 }
   0x3   :  { %s17_s16 = sshll.u32 %s199_s15, 4  ;;  %s28_s19 = sshll.u32 %s250_s1, 4  ;;  %s18_s16 = int_to_ptr.vmem [resolvable:$true] %s17_s16  ;;  %s29_s19 = int_to_ptr.hbm [resolvable:$true] %s28_s19 }
   0x4   :  { %s200_s20 = smov 128   ;;  %s201_s21 = smov 8  }
   0x5   :  { %23 = dma.hbm_to_vmem [thread:$0]  %s16_s14, 256, %s18_s16, [#allocation3], %s200_s20, %s200_s20, %s201_s21  }
   0x6   :  { %s202_s22 = smov [#allocation5]  }
   0x7   :  { %s30_s23 = sshll.u32 %s202_s22, 4  ;;  %s31_s23 = int_to_ptr.vmem [resolvable:$true] %s30_s23 }
   0x8   :  { %36 = dma.hbm_to_vmem [thread:$0]  %s29_s19, 512, %s31_s23, [#allocation6], %s200_s20, %s200_s20, %s201_s21  }
   0x9   :  { %193 = dma.done.wait [#allocation3], 256  }
   0xa   :  { %194 = vsyncadd [#allocation3], 4294967040 }
   0xb   :  { %195 = dma.done.wait [#allocation6], 512  }
   0xc   :  { %196 = vsyncadd [#allocation6], 4294966784  ;;  %v52_v0 = vld [vmem:[#allocation5 + $0x18] sm:$0xff]  ;;  %v51_v1 = vld [vmem:[#allocation5 + $0x10] sm:$0xff]  ;;  %vm57_vm0 = vcmask 261120   ;;  %s203_s24 = smov [#allocation7]  }
   0xd   :  { %76 = vmatpush.msra.mxu0 %v52_v0  ;;  %111 = vmatpush.msra.mxu1 %v52_v0  ;;  %v50_v2 = vld [vmem:[#allocation5 + $0x8] sm:$0xff]  ;;  %v49_v3 = vld [vmem:[#allocation5] sm:$0xff]  ;;  %v47_v4 = vld [vmem:[#allocation2] sm:$0xff]  ;;  %s93_s25 = sshll.u32 %s203_s24, 4  ;;  %s95_s28 = sshll.u32 %s252_s3, 4  ;;  %s94_s25 = int_to_ptr.vmem [resolvable:$true] %s93_s25  ;;  %s96_s28 = int_to_ptr.hbm [resolvable:$true] %s95_s28 }
   0xe   :  { %v48_v5 = vld [vmem:[#allocation2 + $0x8] sm:$0xff]  ;;  %v120_v6 = vld [vmem:[%s251_s2] ss:$0 sm:$0xff] }
   0xf   :  { %77 = vmatpush.msra.mxu0 %v51_v1  ;;  %112 = vmatpush.msra.mxu1 %v51_v1 }
  0x11   :  { %78 = vmatpush.msra.mxu0 %v50_v2  ;;  %113 = vmatpush.msra.mxu1 %v50_v2 }
  0x13   :  { %79 = vmatpush.msra.mxu0 %v49_v3  ;;  %114 = vmatpush.msra.mxu1 %v49_v3 }
  0x14   :  { %109 = vmatmul.msk.f32.vlgmr.msra.gmra.mxu0 %vm57_vm0, %v47_v4  ;;  %110 = vmatmul.msk.f32.vlgmr.msra.gmra.mxu1 %vm57_vm0, %v48_v5 }
  0x91   :  { %v81_v7 = vpop.f32.mrf.mxu0  ;;  %v84_v8 = vpop.f32.mrf.mxu1 }
  0x92   :  { %v82_v9 = vadd.f32 %v120_v6, %v81_v7  ;;  %v85_v10 = vadd.f32 %v120_v6, %v84_v8 }
  0x94   :  { %87 = vst.msk [vmem:[#allocation7] sm:$0xff] %vm57_vm0, %v82_v9 }
  0x95   :  { %88 = vst.msk [vmem:[#allocation7 + $0x8] sm:$0xff] %vm57_vm0, %v85_v10 }
  0x96   :  { %101 = dma.vmem_to_hbm [thread:$0]  %s94_s25, 256, %s96_s28, [#allocation4], %s200_s20, %s200_s20, %s201_s21  }
  0x97   :  { %197 = dma.done.wait [#allocation4], 256  }
  0x98   :  { %198 = vsyncadd [#allocation4], 4294967040 }
  0x99   :  { %106 = vsyncpa [#allocation3], 1 }
  0x9a   :  { %107 = vsyncpa [#allocation6], 1 }
  0x9b   :  { %108 = vsyncpa [#allocation4], 1 }

</bundles_post_ra>
